<compile_context>
chip_gen: v6e
topology: v6e:2x2x1
jax: 0.10.0
libtpu: 0.0.40
codegen_flags: <defaults>
</compile_context>

<pallas_src>
import functools

import jax
import jax.numpy as jnp
from jax.experimental import pallas as pl
from jax.experimental.pallas import tpu as pltpu


def _round_up(x, m):
    return ((x + m - 1) // m) * m


def _cdiv(a, b):
    return -(-a // b)


def _expectation_loss_kernel(x_ref, g_ref, w_ref, o_ref, acc_ref, *,
                             n_groups, steps, tg):
    # x_ref:  (TG, 128*C) probs, native dtype, lane-interleaved row groups.
    # g_ref:  (TG, 128)   targets, native dtype.
    # w_ref:  (128*C, 128) constant weight/compaction matrix.
    # o_ref:  (1, 1) f32  per-split partial sum of |E[cls] - gt|.
    # acc_ref:(TG, 128) f32 accumulator, persists across the inner grid axis.
    s = pl.program_id(0)
    i = pl.program_id(1)

    @pl.when(i == 0)
    def _init():
        acc_ref[...] = jnp.zeros_like(acc_ref)

    # Weighted class sum + interleave->per-sample compaction in one matmul on
    # the otherwise-idle MXU.  Native-dtype operands, f32 accumulation.
    expectation = jnp.dot(x_ref[...], w_ref[...],
                          preferred_element_type=jnp.float32)      # (TG, 128)
    err = jnp.abs(expectation - g_ref[...].astype(jnp.float32))

    # In-kernel tail mask: row groups beyond the true group count (ragged grid
    # tail and any overflow blocks from rounding up to num_splits) contribute 0.
    logical_block = s * steps + i
    gid = logical_block * tg + jax.lax.broadcasted_iota(jnp.int32, err.shape, 0)
    acc_ref[...] += jnp.where(gid < n_groups, err, 0.0)

    @pl.when(i == pl.num_programs(1) - 1)
    def _finalize():
        o_ref[...] = jnp.sum(acc_ref[...], keepdims=True)


def expectation_loss(probs, gts, *, block_samples=131072, num_splits=2):
    """mean(|probs @ [1..C] - gts|) as a Pallas TPU kernel.

    probs: (N, C) class probabilities, any float dtype (DMA'd as-is).
    gts:   (N,)   targets (native dtype, cast to f32 inside the kernel).
    """
    n, c = probs.shape
    orig_n = n

    # Only a non-128-aligned N needs a (tiny, <=127 row) zero pad; padded rows
    # contribute |0 - 0| = 0 and the mean divides by the true N below.
    n128 = _round_up(n, 128)
    if n128 != n:
        probs = jnp.pad(probs, ((0, n128 - n), (0, 0)))
        gts = jnp.pad(gts, (0, n128 - n))

    n_groups = n128 // 128           # 128-sample row groups
    lanes = 128 * c                  # lane-dense row width after reshape

    # Free, contiguous reshapes (no HBM pass): (N,C)->(G,128C), (N,)->(G,128).
    x2 = probs.reshape(n_groups, lanes)
    g2 = gts.reshape(n_groups, 128)

    # Constant weight/compaction matrix: W[l, j] = (l%C + 1) if l//C == j.
    # Same dtype as probs so the MXU gets a homogeneous-dtype matmul
    # (1..C are exactly representable in bf16/f32).
    l_idx = jnp.arange(lanes, dtype=jnp.int32)[:, None]
    j_idx = jnp.arange(128, dtype=jnp.int32)[None, :]
    w = jnp.where(l_idx // c == j_idx, l_idx % c + 1, 0).astype(probs.dtype)

    # Row-group tile: big enough to amortize per-step overhead, multiple of 8
    # sublanes (or the full axis when it is small).
    tg_cap = max(8, (block_samples // 128 // 8) * 8)
    tg = n_groups if n_groups <= tg_cap else tg_cap
    nb = _cdiv(n_groups, tg)
    num_splits = max(1, min(num_splits, nb))     # 2 TCs on v7x; no-op elsewhere
    steps = _cdiv(nb, num_splits)

    def data_idx(s, i):
        # Clamp overflow blocks (from rounding nb up to num_splits) in-bounds;
        # the in-kernel mask (which uses the *logical* index) zeroes them out.
        return (jnp.minimum(s * steps + i, nb - 1), 0)

    kernel = functools.partial(_expectation_loss_kernel,
                               n_groups=n_groups, steps=steps, tg=tg)
    partial_sums = pl.pallas_call(
        kernel,
        out_shape=jax.ShapeDtypeStruct((num_splits, 1), jnp.float32),
        grid_spec=pltpu.PrefetchScalarGridSpec(
            num_scalar_prefetch=0,
            grid=(num_splits, steps),
            in_specs=[
                pl.BlockSpec((tg, lanes), data_idx),
                pl.BlockSpec((tg, 128), data_idx),
                pl.BlockSpec((lanes, 128), lambda s, i: (0, 0)),  # DMA'd once
            ],
            out_specs=pl.BlockSpec((1, 1), lambda s, i: (s, 0)),
            scratch_shapes=[pltpu.VMEM((tg, 128), jnp.float32)],
        ),
        compiler_params=pltpu.CompilerParams(
            dimension_semantics=("parallel", "arbitrary"),
        ),
    )(x2, g2, w)

    # Combine per-split partial sums; divide by the TRUE sample count once.
    return jnp.sum(partial_sums) / jnp.float32(orig_n)


def expectation_loss_ref(probs, gts):
    c = probs.shape[1]
    cls_vec = jnp.arange(1, c + 1, dtype=jnp.float32)
    expectation = probs.astype(jnp.float32) @ cls_vec
    return jnp.mean(jnp.abs(expectation - gts.astype(jnp.float32)))


if __name__ == "__main__":
    key = jax.random.PRNGKey(0)
    k1, k2, k3, k4 = jax.random.split(key, 4)

    # Small, 128-aligned batch -> free-reshape fast path, single block.
    N, C = 384, 5
    probs = jax.nn.softmax(jax.random.normal(k1, (N, C), dtype=jnp.float32), -1)
    gts = jax.random.uniform(k2, (N,), minval=1.0, maxval=5.0, dtype=jnp.float32)

    ref = expectation_loss_ref(probs, gts)
    loss = expectation_loss(probs, gts)
    jax.block_until_ready(loss)
    assert jnp.allclose(loss, ref, rtol=1e-5, atol=1e-5), (loss, ref)

    # Non-128-aligned N exercises the (tiny) pad fallback.
    ref300 = expectation_loss_ref(probs[:300], gts[:300])
    loss300 = expectation_loss(probs[:300], gts[:300])
    jax.block_until_ready(loss300)
    assert jnp.allclose(loss300, ref300, rtol=1e-5, atol=1e-5), (loss300, ref300)

    # Larger batch with small tiles -> multi-step grid, 2 splits, accumulator,
    # in-kernel tail masking (21 row groups, tg=8, nb=3, grid=(2,2)).
    N2 = 2688
    probs2 = jax.nn.softmax(jax.random.normal(k3, (N2, C), dtype=jnp.float32), -1)
    gts2 = jax.random.uniform(k4, (N2,), minval=1.0, maxval=5.0, dtype=jnp.float32)
    ref2 = expectation_loss_ref(probs2, gts2)
    loss2 = expectation_loss(probs2, gts2, block_samples=1024, num_splits=2)
    jax.block_until_ready(loss2)
    assert jnp.allclose(loss2, ref2, rtol=1e-5, atol=1e-5), (loss2, ref2)

    # Native bf16 probs feed the MXU directly (f32 accumulation inside).
    loss_bf16 = expectation_loss(probs.astype(jnp.bfloat16), gts)
    jax.block_until_ready(loss_bf16)
    assert jnp.allclose(loss_bf16, ref, rtol=0.0, atol=5e-2), (loss_bf16, ref)

    print("KERNEL_OK")
</pallas_src>

<mosaic_0001>
module attributes {stable_mosaic.version = 11 : i64} {
  func.func @_expectation_loss_kernel(%arg0: i32, %arg1: i32, %arg2: memref<3x640xf32, #tpu.memory_space<vmem>>, %arg3: memref<3x128xf32, #tpu.memory_space<vmem>>, %arg4: memref<640x128xf32, #tpu.memory_space<vmem>>, %arg5: memref<1x1xf32, #tpu.memory_space<vmem>>, %arg6: memref<3x128xf32, #tpu.memory_space<vmem>>) attributes {dimension_semantics = [#tpu.dimension_semantics<parallel>, #tpu.dimension_semantics<arbitrary>], iteration_bounds = array<i64: 1, 1>, scalar_prefetch = 0 : i64, scratch_operands = 1 : i64, tpu.core_type = #tpu.core_type<tc>, window_params = [{transform_indices = @transform_0, window_bounds = array<i64: 3, 640>}, {transform_indices = @transform_1, window_bounds = array<i64: 3, 128>}, {pipeline_mode = #tpu.pipeline_mode<synchronous>, transform_indices = @transform_2, window_bounds = array<i64: 640, 128>}, {transform_indices = @transform_3, window_bounds = array<i64: 1, 1>}]} {
    %c0_i32 = arith.constant 0 : i32
    %0 = arith.cmpi eq, %arg1, %c0_i32 : i32
    %1 = arith.extui %0 : i1 to i32
    %c0_i32_0 = arith.constant 0 : i32
    %2 = arith.cmpi ne, %1, %c0_i32_0 : i32
    scf.if %2 {
      %cst_14 = arith.constant 0.000000e+00 : f32
      %25 = vector.broadcast %cst_14 : f32 to vector<3x128xf32>
      %c0_15 = arith.constant 0 : index
      %c0_16 = arith.constant 0 : index
      %26 = vector.load %arg6[%c0_15, %c0_16] : memref<3x128xf32, #tpu.memory_space<vmem>>, vector<3x128xf32>
      tpu.vector_store %arg6[%c0_15, %c0_16], %25 {strides = array<i32>} : memref<3x128xf32, #tpu.memory_space<vmem>>, vector<3x128xf32>,
    } else {
    }
    %c0 = arith.constant 0 : index
    %c0_1 = arith.constant 0 : index
    %3 = vector.load %arg2[%c0, %c0_1] : memref<3x640xf32, #tpu.memory_space<vmem>>, vector<3x640xf32>
    %c0_2 = arith.constant 0 : index
    %c0_3 = arith.constant 0 : index
    %4 = vector.load %arg4[%c0_2, %c0_3] : memref<640x128xf32, #tpu.memory_space<vmem>>, vector<640x128xf32>
    %cst = arith.constant dense<0.000000e+00> : vector<3x128xf32>
    %5 = tpu.matmul %3, %4, %cst {dimension_numbers = #tpu.dot_dimension_numbers<[1], [0], [0], [1], [0, 0, 1, 1], [], []>} : vector<3x640xf32>, vector<640x128xf32>, vector<3x128xf32> -> vector<3x128xf32>
    %c0_4 = arith.constant 0 : index
    %c0_5 = arith.constant 0 : index
    %6 = vector.load %arg3[%c0_4, %c0_5] : memref<3x128xf32, #tpu.memory_space<vmem>>, vector<3x128xf32>
    %7 = arith.subf %5, %6 : vector<3x128xf32>
    %8 = math.absf %7 : vector<3x128xf32>
    %c1_i32 = arith.constant 1 : i32
    %9 = arith.muli %arg0, %c1_i32 : i32
    %10 = arith.addi %9, %arg1 : i32
    %c3_i32 = arith.constant 3 : i32
    %11 = arith.muli %10, %c3_i32 : i32
    %12 = tpu.iota {dimensions = array<i32: 0>} : vector<3x128xi32>
    %13 = vector.broadcast %11 : i32 to vector<3x128xi32>
    %14 = arith.addi %13, %12 : vector<3x128xi32>
    %c0_6 = arith.constant 0 : index
    %c0_7 = arith.constant 0 : index
    %15 = vector.load %arg6[%c0_6, %c0_7] : memref<3x128xf32, #tpu.memory_space<vmem>>, vector<3x128xf32>
    %c3_i32_8 = arith.constant 3 : i32
    %16 = vector.broadcast %c3_i32_8 : i32 to vector<3x128xi32>
    %17 = arith.cmpi slt, %14, %16 : vector<3x128xi32>
    %cst_9 = arith.constant 0.000000e+00 : f32
    %18 = vector.broadcast %cst_9 : f32 to vector<3x128xf32>
    %19 = arith.select %17, %8, %18 : vector<3x128xi1>, vector<3x128xf32>
    %20 = arith.addf %15, %19 : vector<3x128xf32>
    %c0_10 = arith.constant 0 : index
    %c0_11 = arith.constant 0 : index
    %21 = vector.load %arg6[%c0_10, %c0_11] : memref<3x128xf32, #tpu.memory_space<vmem>>, vector<3x128xf32>
    tpu.vector_store %arg6[%c0_10, %c0_11], %20 {strides = array<i32>} : memref<3x128xf32, #tpu.memory_space<vmem>>, vector<3x128xf32>,
    %c0_i32_12 = arith.constant 0 : i32
    %22 = arith.cmpi eq, %arg1, %c0_i32_12 : i32
    %23 = arith.extui %22 : i1 to i32
    %c0_i32_13 = arith.constant 0 : i32
    %24 = arith.cmpi ne, %23, %c0_i32_13 : i32
    scf.if %24 {
      %c0_14 = arith.constant 0 : index
      %c0_15 = arith.constant 0 : index
      %25 = vector.load %arg6[%c0_14, %c0_15] : memref<3x128xf32, #tpu.memory_space<vmem>>, vector<3x128xf32>
      %26 = vector.shape_cast %25 : vector<3x128xf32> to vector<1x3x128xf32>
      %cst_16 = arith.constant dense<0.000000e+00> : vector<1xf32>
      %27 = vector.multi_reduction <add>, %26, %cst_16 [1, 2] : vector<1x3x128xf32> to vector<1xf32>
      %28 = vector.shape_cast %27 : vector<1xf32> to vector<1x1x1xf32>
      %29 = vector.extract %28[0, 0, 0] : f32 from vector<1x1x1xf32>
      %30 = vector.broadcast %29 : f32 to vector<1x1xf32>
      %c0_17 = arith.constant 0 : index
      %c0_18 = arith.constant 0 : index
      %31 = vector.load %arg5[%c0_17, %c0_18] : memref<1x1xf32, #tpu.memory_space<vmem>>, vector<1x1xf32>
      tpu.vector_store %arg5[%c0_17, %c0_18], %30 {strides = array<i32>} : memref<1x1xf32, #tpu.memory_space<vmem>>, vector<1x1xf32>,
    } else {
    }
    return
  }
  func.func @transform_0(%arg0: i32, %arg1: i32) -> (i32, i32) {
    %c1_i32 = arith.constant 1 : i32
    %0 = arith.muli %arg0, %c1_i32 : i32
    %1 = arith.addi %0, %arg1 : i32
    %c0_i32 = arith.constant 0 : i32
    %2 = arith.minsi %1, %c0_i32 : i32
    %c0_i32_0 = arith.constant 0 : i32
    %c0_i32_1 = arith.constant 0 : i32
    return %2, %c0_i32_0 : i32, i32
  }
  func.func @transform_1(%arg0: i32, %arg1: i32) -> (i32, i32) {
    %c1_i32 = arith.constant 1 : i32
    %0 = arith.muli %arg0, %c1_i32 : i32
    %1 = arith.addi %0, %arg1 : i32
    %c0_i32 = arith.constant 0 : i32
    %2 = arith.minsi %1, %c0_i32 : i32
    %c0_i32_0 = arith.constant 0 : i32
    %c0_i32_1 = arith.constant 0 : i32
    return %2, %c0_i32_0 : i32, i32
  }
  func.func @transform_2(%arg0: i32, %arg1: i32) -> (i32, i32) {
    %c0_i32 = arith.constant 0 : i32
    %c0_i32_0 = arith.constant 0 : i32
    %c0_i32_1 = arith.constant 0 : i32
    return %c0_i32, %c0_i32_0 : i32, i32
  }
  func.func @transform_3(%arg0: i32, %arg1: i32) -> (i32, i32) {
    %c0_i32 = arith.constant 0 : i32
    %c0_i32_0 = arith.constant 0 : i32
    return %arg0, %c0_i32 : i32, i32
  }
}

</mosaic_0001>

<bundles_post_ra>
// kernel: tpu_custom_call.1
= control target key start
LH: loop header
LB: loop body
LE: loop exit
PB: predicated region body
PF: predicated region fallthrough
CT: control target
= control target key end

     0   :  { %8 = vsyncpa [#allocation4], 0  ;;  %s703_s0 = inlined_call_operand.hbm [shape: f32[3,640], index: 0, kind: input, shape index: {}]   ;;  %s704_s1 = inlined_call_operand.hbm [shape: f32[3,128], index: 1, kind: input, shape index: {}]   ;;  %s705_s2 = inlined_call_operand.hbm [shape: f32[640,128], index: 2, kind: input, shape index: {}]   ;;  %s706_s3 = inlined_call_operand.hbm [shape: f32[1,1], index: 3, kind: output, shape index: {}]  }
   0x1   :  { %9 = vsyncpa [#allocation7], 0 }
   0x2   :  { %10 = vsyncpa [#allocation5], 0  ;;  %s645_s12 = smov [#allocation6]   ;;  %s646_s14 = smov [#allocation3]  }
   0x3   :  { %s38_s13 = sshll.u32 %s645_s12, 4  ;;  %s23_s15 = sshll.u32 %s646_s14, 4  ;;  %s39_s13 = int_to_ptr.vmem [resolvable:$true] %s38_s13  ;;  %s24_s15 = int_to_ptr.vmem [resolvable:$true] %s23_s15 }
   0x4   :  { %s567_s16 = scalar_lea.vmem %s39_s13, 64  ;;  %p572_p1 = scmp.lt.s32.totalorder %s39_s13, %s39_s13 }
   0x5   :  { %p568_p0 = scmp.ne.s32.totalorder %s39_s13, %s567_s16  ;;  %p573_p2 = scmp.lt.s32.totalorder %s567_s16, %s567_s16 }
   0x7   :  { %p574_p3 = por %p573_p2, %p572_p1 }
   0x9   :  { %p575_p4 = pnand %p574_p3, %p568_p0 }
   0xb   :  { %578 = shalt.err (!%p575_p4)
}
   0xc   :  { %41 = dma.hbm_to_vmem [thread:$0]  %s704_s1, 64, %s39_s13, [#allocation7]  }
   0xd   :  { %s587_s19 = scalar_lea.vmem %s24_s15, 320  ;;  %p592_p6 = scmp.lt.s32.totalorder %s24_s15, %s24_s15 }
   0xe   :  { %p588_p5 = scmp.ne.s32.totalorder %s24_s15, %s587_s19  ;;  %p593_p7 = scmp.lt.s32.totalorder %s587_s19, %s587_s19 }
  0x10   :  { %p594_p8 = por %p593_p7, %p592_p6 }
  0x12   :  { %p595_p9 = pnand %p594_p8, %p588_p5 }
  0x14   :  { %598 = shalt.err (!%p595_p9)
}
  0x15   :  { %26 = dma.hbm_to_vmem [thread:$0]  %s703_s0, 320, %s24_s15, [#allocation4]  }
  0x16   :  { %s647_s22 = smov [#allocation8]  }
  0x17   :  { %s47_s23 = sshll.u32 %s647_s22, 4  ;;  %s48_s23 = int_to_ptr.vmem [resolvable:$true] %s47_s23 }
  0x18   :  { %s607_s24 = scalar_lea.vmem %s48_s23, 10240  ;;  %p612_p11 = scmp.lt.s32.totalorder %s48_s23, %s48_s23 }
  0x19   :  { %p608_p10 = scmp.ne.s32.totalorder %s48_s23, %s607_s24  ;;  %p613_p12 = scmp.lt.s32.totalorder %s607_s24, %s607_s24 }
  0x1b   :  { %p614_p13 = por %p613_p12, %p612_p11 }
  0x1d   :  { %p615_p0 = pnand %p614_p13, %p608_p10 }
  0x1f   :  { %618 = shalt.err (!%p615_p0)
}
  0x20   :  { %s648_s1 = smov 128   ;;  %s649_s25 = smov 8  }
  0x21   :  { %53 = dma.hbm_to_vmem [thread:$0]  %s705_s2, 10240, %s48_s23, [#allocation7], %s648_s1, %s648_s1, %s649_s25  }
  0x22   :  { %639 = dma.done.wait [#allocation4], 320  }
  0x23   :  { %640 = vsyncadd [#allocation4], 4294966976 }
  0x24   :  { %641 = dma.done.wait [#allocation7], 10304  }
  0x25   :  { %642 = vsyncadd [#allocation7], 4294956992  ;;  %v650_v0 = vmov 0.0   ;;  %v108_v1 = vld [vmem:[#allocation8 + $0xf8] sm:$0xff]  ;;  %v107_v5 = vld [vmem:[#allocation8 + $0xf0] sm:$0xff]  ;;  %vm651_vm0 = vmmov 0  }
  0x26   :  { %73 = vst [vmem:[#allocation2] sm:$0x7] %v650_v0  ;;  %v140_v2 = vld [vmem:[#allocation8 + $0x1f8] sm:$0xff]  ;;  %425 = vmatprep.subr.mxu0 %v108_v1  ;;  %v139_v6 = vld [vmem:[#allocation8 + $0x1f0] sm:$0xff]  ;;  %v106_v9 = vld [vmem:[#allocation8 + $0xe8] sm:$0xff]  ;;  %vm391_vm2 = vcmask 1042432  }
  0x27   :  { %v92_v3 = vld [vmem:[#allocation8 + $0x78] sm:$0xff]  ;;  %460 = vmatprep.subr.mxu1 %v140_v2  ;;  %v91_v7 = vld [vmem:[#allocation8 + $0x70] sm:$0xff]  ;;  %v138_v10 = vld [vmem:[#allocation8 + $0x1e8] sm:$0xff]  ;;  %s652_s0 = smov [#allocation9]   ;;  %vm403_vm3 = vcmask 0  }
  0x28   :  { %v124_v4 = vld [vmem:[#allocation8 + $0x178] sm:$0xff]  ;;  %426 = vmatpush3.msra.mxu0 %v92_v3  ;;  %v123_v8 = vld [vmem:[#allocation8 + $0x170] sm:$0xff]  ;;  %v90_v11 = vld [vmem:[#allocation8 + $0x68] sm:$0xff]  ;;  %s411_s2 = sshll.u32 %s652_s0, 4  ;;  %s412_s2 = int_to_ptr.vmem [resolvable:$true] %s411_s2 }
  0x29   :  { %461 = vmatpush3.msra.mxu1 %v124_v4  ;;  %427 = vmatprep.subr.mxu0 %v107_v5  ;;  %v122_v12 = vld [vmem:[#allocation8 + $0x168] sm:$0xff]  ;;  %v105_v13 = vld [vmem:[#allocation8 + $0xe0] sm:$0xff]  ;;  %v104_v17 = vld [vmem:[#allocation8 + $0xd8] sm:$0xff]  ;;  %s619_s29 = scalar_lea.vmem %s412_s2, 16  ;;  %s623_s30 = scalar_lea.vmem %s412_s2, 32 }
  0x2a   :  { %462 = vmatprep.subr.mxu1 %v139_v6  ;;  %428 = vmatpush3.msra.mxu0 %v91_v7  ;;  %v137_v14 = vld [vmem:[#allocation8 + $0x1e0] sm:$0xff]  ;;  %v136_v18 = vld [vmem:[#allocation8 + $0x1d8] sm:$0xff]  ;;  %v103_v21 = vld [vmem:[#allocation8 + $0xd0] sm:$0xff]  ;;  %p620_p1 = scmp.ne.s32.totalorder %s412_s2, %s619_s29  ;;  %p624_p2 = scmp.lt.s32.totalorder %s412_s2, %s412_s2 }
  0x2b   :  { %463 = vmatpush3.msra.mxu1 %v123_v8  ;;  %429 = vmatprep.subr.mxu0 %v106_v9  ;;  %v89_v15 = vld [vmem:[#allocation8 + $0x60] sm:$0xff]  ;;  %v88_v19 = vld [vmem:[#allocation8 + $0x58] sm:$0xff]  ;;  %v135_v22 = vld [vmem:[#allocation8 + $0x1d0] sm:$0xff]  ;;  %p625_p3 = scmp.lt.s32.totalorder %s623_s30, %s619_s29 }
  0x2c   :  { %464 = vmatprep.subr.mxu1 %v138_v10  ;;  %v121_v16 = vld [vmem:[#allocation8 + $0x160] sm:$0xff]  ;;  %430 = vmatpush3.msra.mxu0 %v90_v11  ;;  %v120_v20 = vld [vmem:[#allocation8 + $0x158] sm:$0xff]  ;;  %v87_v23 = vld [vmem:[#allocation8 + $0x50] sm:$0xff] }
  0x2d   :  { %465 = vmatpush3.msra.mxu1 %v122_v12  ;;  %431 = vmatprep.subr.mxu0 %v105_v13  ;;  %v119_v24 = vld [vmem:[#allocation8 + $0x150] sm:$0xff]  ;;  %v102_v25 = vld [vmem:[#allocation8 + $0xc8] sm:$0xff]  ;;  %v101_v29 = vld [vmem:[#allocation8 + $0xc0] sm:$0xff]  ;;  %p626_p4 = por %p625_p3, %p624_p2 }
  0x2e   :  { %466 = vmatprep.subr.mxu1 %v137_v14  ;;  %432 = vmatpush3.msra.mxu0 %v89_v15  ;;  %v134_v26 = vld [vmem:[#allocation8 + $0x1c8] sm:$0xff]  ;;  %v133_v30 = vld [vmem:[#allocation8 + $0x1c0] sm:$0xff]  ;;  %v100_v33 = vld [vmem:[#allocation8 + $0xb8] sm:$0xff] }
  0x2f   :  { %467 = vmatpush3.msra.mxu1 %v121_v16  ;;  %433 = vmatprep.subr.mxu0 %v104_v17  ;;  %v86_v27 = vld [vmem:[#allocation8 + $0x48] sm:$0xff]  ;;  %v85_v31 = vld [vmem:[#allocation8 + $0x40] sm:$0xff]  ;;  %v132_v34 = vld [vmem:[#allocation8 + $0x1b8] sm:$0xff]  ;;  %p627_p5 = pnand %p626_p4, %p620_p1 }
  0x30   :  { %468 = vmatprep.subr.mxu1 %v136_v18  ;;  %434 = vmatpush3.msra.mxu0 %v88_v19  ;;  %v118_v28 = vld [vmem:[#allocation8 + $0x148] sm:$0xff]  ;;  %v117_v32 = vld [vmem:[#allocation8 + $0x140] sm:$0xff]  ;;  %v84_v35 = vld [vmem:[#allocation8 + $0x38] sm:$0xff] }
  0x31   :  { %469 = vmatpush3.msra.mxu1 %v120_v20  ;;  %435 = vmatprep.subr.mxu0 %v103_v21  ;;  %v116_v36 = vld [vmem:[#allocation8 + $0x138] sm:$0xff]  ;;  %v99_v37 = vld [vmem:[#allocation8 + $0xb0] sm:$0xff]  ;;  %v98_v41 = vld [vmem:[#allocation8 + $0xa8] sm:$0xff] }
  0x32   :  { %470 = vmatprep.subr.mxu1 %v135_v22  ;;  %436 = vmatpush3.msra.mxu0 %v87_v23  ;;  %v131_v38 = vld [vmem:[#allocation8 + $0x1b0] sm:$0xff]  ;;  %v130_v42 = vld [vmem:[#allocation8 + $0x1a8] sm:$0xff]  ;;  %v97_v45 = vld [vmem:[#allocation8 + $0xa0] sm:$0xff] }
  0x33   :  { %471 = vmatpush3.msra.mxu1 %v119_v24  ;;  %437 = vmatprep.subr.mxu0 %v102_v25  ;;  %v83_v39 = vld [vmem:[#allocation8 + $0x30] sm:$0xff]  ;;  %v82_v43 = vld [vmem:[#allocation8 + $0x28] sm:$0xff]  ;;  %v129_v46 = vld [vmem:[#allocation8 + $0x1a0] sm:$0xff] }
  0x34   :  { %472 = vmatprep.subr.mxu1 %v134_v26  ;;  %438 = vmatpush3.msra.mxu0 %v86_v27  ;;  %v115_v40 = vld [vmem:[#allocation8 + $0x130] sm:$0xff]  ;;  %v114_v44 = vld [vmem:[#allocation8 + $0x128] sm:$0xff]  ;;  %v81_v47 = vld [vmem:[#allocation8 + $0x20] sm:$0xff] }
  0x35   :  { %473 = vmatpush3.msra.mxu1 %v118_v28  ;;  %439 = vmatprep.subr.mxu0 %v101_v29  ;;  %v113_v48 = vld [vmem:[#allocation8 + $0x120] sm:$0xff]  ;;  %v96_v49 = vld [vmem:[#allocation8 + $0x98] sm:$0xff]  ;;  %v95_v53 = vld [vmem:[#allocation8 + $0x90] sm:$0xff]  ;;  %v378_v29 = vlaneseq }
  0x36   :  { %474 = vmatprep.subr.mxu1 %v133_v30  ;;  %440 = vmatpush3.msra.mxu0 %v85_v31  ;;  %v128_v50 = vld [vmem:[#allocation8 + $0x198] sm:$0xff]  ;;  %v127_v54 = vld [vmem:[#allocation8 + $0x190] sm:$0xff]  ;;  %v74_v57 = vld [vmem:[#allocation3] sm:$0x77] }
  0x37   :  { %475 = vmatpush3.msra.mxu1 %v117_v32  ;;  %441 = vmatprep.subr.mxu0 %v100_v33  ;;  %v80_v51 = vld [vmem:[#allocation8 + $0x18] sm:$0xff]  ;;  %v79_v55 = vld [vmem:[#allocation8 + $0x10] sm:$0xff]  ;;  %v94_v58 = vld [vmem:[#allocation8 + $0x88] sm:$0xff]  ;;  %v159_v2 = vcombine.high %v74_v57, %v74_v57  ;;  %v379_v33 = vshrl.u32 %v378_v29, 7 }
  0x38   :  { %476 = vmatprep.subr.mxu1 %v132_v34  ;;  %442 = vmatpush3.msra.mxu0 %v84_v35  ;;  %v112_v52 = vld [vmem:[#allocation8 + $0x118] sm:$0xff]  ;;  %v111_v56 = vld [vmem:[#allocation8 + $0x110] sm:$0xff]  ;;  %v126_v59 = vld [vmem:[#allocation8 + $0x188] sm:$0xff] }
  0x39   :  { %477 = vmatpush3.msra.mxu1 %v116_v36  ;;  %443 = vmatprep.subr.mxu0 %v99_v37  ;;  %v75_v60 = vld [vmem:[#allocation3 + $0x8] sm:$0x77]  ;;  %v78_v61 = vld [vmem:[#allocation8 + $0x8] sm:$0xff]  ;;  %v93_v63 = vld [vmem:[#allocation8 + $0x80] sm:$0xff]  ;;  %vm383_vm1 = vcmp.lt.s32.totalorder %v379_v33, 3 }
  0x3a   :  { %478 = vmatprep.subr.mxu1 %v131_v38  ;;  %444 = vmatpush3.msra.mxu0 %v83_v39  ;;  %v110_v62 = vld [vmem:[#allocation8 + $0x108] sm:$0xff]  ;;  %v125_v1 = vld [vmem:[#allocation8 + $0x180] sm:$0xff]  ;;  %v160_v4 = vcombine.high %v75_v60, %v75_v60  ;;  %v156_v6 = vld [vmem:[#allocation8 + $0x278] sm:$0xff] }
  0x3b   :  { %479 = vmatpush3.msra.mxu1 %v115_v40  ;;  %445 = vmatprep.subr.mxu0 %v98_v41  ;;  %v77_v3 = vld [vmem:[#allocation8] sm:$0xff]  ;;  %v155_v7 = vld [vmem:[#allocation8 + $0x270] sm:$0xff]  ;;  %v154_v8 = vld [vmem:[#allocation8 + $0x268] sm:$0xff] }
  0x3c   :  { %480 = vmatprep.subr.mxu1 %v130_v42  ;;  %446 = vmatpush3.msra.mxu0 %v82_v43  ;;  %v109_v5 = vld [vmem:[#allocation8 + $0x100] sm:$0xff]  ;;  %v152_v10 = vld [vmem:[#allocation8 + $0x258] sm:$0xff]  ;;  %v151_v11 = vld [vmem:[#allocation8 + $0x250] sm:$0xff] }
  0x3d   :  { %481 = vmatpush3.msra.mxu1 %v114_v44  ;;  %447 = vmatprep.subr.mxu0 %v97_v45  ;;  %v153_v9 = vld [vmem:[#allocation8 + $0x260] sm:$0xff]  ;;  %v150_v12 = vld [vmem:[#allocation8 + $0x248] sm:$0xff]  ;;  %v148_v14 = vld [vmem:[#allocation8 + $0x238] sm:$0xff] }
  0x3e   :  { %482 = vmatprep.subr.mxu1 %v129_v46  ;;  %448 = vmatpush3.msra.mxu0 %v81_v47  ;;  %v149_v13 = vld [vmem:[#allocation8 + $0x240] sm:$0xff]  ;;  %v147_v15 = vld [vmem:[#allocation8 + $0x230] sm:$0xff]  ;;  %v146_v16 = vld [vmem:[#allocation8 + $0x228] sm:$0xff] }
  0x3f   :  { %483 = vmatpush3.msra.mxu1 %v113_v48  ;;  %449 = vmatprep.subr.mxu0 %v96_v49  ;;  %v145_v17 = vld [vmem:[#allocation8 + $0x220] sm:$0xff]  ;;  %v144_v18 = vld [vmem:[#allocation8 + $0x218] sm:$0xff]  ;;  %v143_v19 = vld [vmem:[#allocation8 + $0x210] sm:$0xff] }
  0x40   :  { %484 = vmatprep.subr.mxu1 %v128_v50  ;;  %450 = vmatpush3.msra.mxu0 %v80_v51  ;;  %v142_v20 = vld [vmem:[#allocation8 + $0x208] sm:$0xff]  ;;  %v141_v21 = vld [vmem:[#allocation8 + $0x200] sm:$0xff]  ;;  %v76_v22 = vld [vmem:[#allocation3 + $0x10] sm:$0x7] }
  0x41   :  { %485 = vmatpush3.msra.mxu1 %v112_v52  ;;  %451 = vmatprep.subr.mxu0 %v95_v53  ;;  %v373_v32 = vld [vmem:[#allocation6] sm:$0x7]  ;;  %v382_v38 = vld [vmem:[#allocation2] sm:$0x7] }
  0x42   :  { %486 = vmatprep.subr.mxu1 %v127_v54  ;;  %452 = vmatpush3.msra.mxu0 %v79_v55 }
  0x43   :  { %487 = vmatpush3.msra.mxu1 %v111_v56  ;;  %453 = vmatprep.subr.mxu0 %v94_v58 }
  0x44   :  { %488 = vmatprep.subr.mxu1 %v126_v59  ;;  %454 = vmatpush3.msra.mxu0 %v78_v61 }
  0x45   :  { %489 = vmatpush3.msra.mxu1 %v110_v62  ;;  %455 = vmatprep.subr.mxu0 %v93_v63 }
  0x46   :  { %490 = vmatprep.subr.mxu1 %v125_v1  ;;  %456 = vmatpush3.msra.mxu0 %v77_v3 }
  0x47   :  { %227 = vmatprep.mubr.f32.mxu0 %v159_v2  ;;  %491 = vmatpush3.msra.mxu1 %v109_v5 }
  0x48   :  { %297 = vmatprep.mubr.f32.mxu1 %v160_v4  ;;  %228 = vmatmul.mubr.f32.vlgmr.msra.gmra.mxu0 %v74_v57 }
  0x49   :  { %298 = vmatmul.mubr.f32.vlgmr.msra.gmra.mxu1 %v75_v60  ;;  %512 = vmatprep.subr.mxu0 %v650_v0 }
  0x4a   :  { %544 = vmatprep.mubr.msk.f32.mxu0 %vm651_vm0, %v650_v0  ;;  %513 = vmatpush3.msra.mxu0 %v156_v6 }
  0x4b   :  { %514 = vmatprep.subr.mxu0 %v650_v0 }
  0x4c   :  { %515 = vmatpush3.msra.mxu0 %v155_v7 }
  0x4d   :  { %516 = vmatprep.subr.mxu0 %v650_v0 }
  0x4e   :  { %517 = vmatpush3.msra.mxu0 %v154_v8 }
  0x4f   :  { %518 = vmatprep.subr.mxu0 %v650_v0 }
  0x50   :  { %519 = vmatpush3.msra.mxu0 %v153_v9 }
  0x51   :  { %520 = vmatprep.subr.mxu0 %v650_v0 }
  0x52   :  { %521 = vmatpush3.msra.mxu0 %v152_v10 }
  0x53   :  { %522 = vmatprep.subr.mxu0 %v650_v0 }
  0x54   :  { %523 = vmatpush3.msra.mxu0 %v151_v11 }
  0x55   :  { %524 = vmatprep.subr.mxu0 %v650_v0 }
  0x56   :  { %525 = vmatpush3.msra.mxu0 %v150_v12 }
  0x57   :  { %526 = vmatprep.subr.mxu0 %v650_v0 }
  0x58   :  { %527 = vmatpush3.msra.mxu0 %v149_v13 }
  0x59   :  { %528 = vmatprep.subr.mxu0 %v650_v0 }
  0x5a   :  { %529 = vmatpush3.msra.mxu0 %v148_v14 }
  0x5b   :  { %530 = vmatprep.subr.mxu0 %v650_v0 }
  0x5c   :  { %531 = vmatpush3.msra.mxu0 %v147_v15 }
  0x5d   :  { %532 = vmatprep.subr.mxu0 %v650_v0 }
  0x5e   :  { %533 = vmatpush3.msra.mxu0 %v146_v16 }
  0x5f   :  { %534 = vmatprep.subr.mxu0 %v650_v0 }
  0x60   :  { %535 = vmatpush3.msra.mxu0 %v145_v17 }
  0x61   :  { %536 = vmatprep.subr.mxu0 %v650_v0 }
  0x62   :  { %537 = vmatpush3.msra.mxu0 %v144_v18 }
  0x63   :  { %538 = vmatprep.subr.mxu0 %v650_v0 }
  0x64   :  { %539 = vmatpush3.msra.mxu0 %v143_v19 }
  0x65   :  { %540 = vmatprep.subr.mxu0 %v650_v0 }
  0x66   :  { %541 = vmatpush3.msra.mxu0 %v142_v20 }
  0x67   :  { %542 = vmatprep.subr.mxu0 %v650_v0 }
  0x68   :  { %543 = vmatpush3.msra.mxu0 %v141_v21 }
  0x69   :  { %545 = vmatmul.mubr.f32.vlgmr.msra.gmra.mxu0 %v76_v22 }
 0x108   :  { %v457_v23 = vpop.f32.mrf.mxu0 }
 0x109   :  { %v492_v24 = vpop.f32.mrf.mxu1 }
 0x10a   :  { %v458_v25 = vpop.f32.mrf.mxu0 }
 0x10b   :  { %v493_v26 = vpop.f32.mrf.mxu1  ;;  %v459_v27 = vadd.f32 %v458_v25, %v457_v23 }
 0x10c   :  { %v494_v28 = vadd.f32 %v493_v26, %v492_v24 }
 0x10e   :  { %v300_v30 = vadd.f32 %v494_v28, %v459_v27 }
 0x129   :  { %v369_v31 = vpop.f32.mrf.mxu0 }
 0x12a   :  { %v370_v34 = vadd.f32 %v369_v31, %v300_v30 }
 0x12b   :  { %v546_v35 = vpop.f32.mrf.mxu0 }
 0x12c   :  { %v374_v36 = vsub.f32 %v370_v34, %v373_v32 }
 0x12e   :  { %v375_v37 = vand.u32 2147483647, %v374_v36 }
 0x130   :  { %v384_v0 = vsel %vm383_vm1, %v375_v37, 0.0 }
 0x131   :  { %v385_v39 = vadd.f32 %v384_v0, %v382_v38 }
 0x133   :  { %386 = vst [vmem:[#allocation2] sm:$0x7] %v385_v39 }
 0x13a   :  { %v390_v40 = vld [vmem:[#allocation2] sm:$0x7] }
 0x13b   :  { %v392_v41 = vsel %vm391_vm2, %v390_v40, 0.0 }
 0x13c   :  { %393 = vadd.xlane.f32.xlu0 %v392_v41 }
 0x1c5   :  { %v394_v42 = vpop.xlane.xlu0 %393 }
 0x1c6   :  { %v395_v43 = vrot.slane %v394_v42, 4 }
 0x1c8   :  { %v396_v44 = vadd.f32 %v395_v43, %v394_v42 }
 0x1ca   :  { %v397_v45 = vrot.slane %v396_v44, 2 }
 0x1cc   :  { %v398_v46 = vadd.f32 %v397_v45, %v396_v44 }
 0x1ce   :  { %v399_v47 = vrot.slane %v398_v46, 1 }
 0x1d0   :  { %v400_v48 = vadd.f32 %v399_v47, %v398_v46 }
 0x1d2   :  { %547 = vpush %v400_v48 }
 0x203   :  { %s548_s28 = spop %547 }
 0x204   :  { %v402_v49 = vstv %s548_s28 }
 0x205   :  { %404 = vst.msk [vmem:[#allocation9] sm:$0x1] %vm403_vm3, %v402_v49 }
 0x206   :  { %630 = shalt.err (!%p627_p5)
}
 0x207   :  { %414 = dma.vmem_to_hbm [thread:$0]  %s412_s2, 16, %s706_s3, [#allocation5]  }
 0x208   :  { %643 = dma.done.wait [#allocation5], 16  }
 0x209   :  { %644 = vsyncadd [#allocation5], 4294967280 }
 0x20a   :  { %418 = vsyncpa [#allocation4], 1 }
 0x20b   :  { %419 = vsyncpa [#allocation7], 1 }
 0x20c   :  { %420 = vsyncpa [#allocation5], 1 }

</bundles_post_ra>
